<compile_context>
chip_gen: v6e
topology: v6e:2x2x1
jax: 0.10.0
libtpu: 0.0.40
codegen_flags: <defaults>
</compile_context>

<pallas_src>
import jax
import jax.numpy as jnp
from jax.experimental import pallas as pl
from jax.experimental.pallas import tpu as pltpu

_P = 128                  # lane padding for every layer dimension (hidden, out pad to 128)
_N_LAYERS = 5
_SINGLE_BLOCK_MAX = 256   # up to this many rows -> single grid step
_MAX_TILE = 1024          # rows per grid step for large batches


def _ray_mlp_kernel(ray_ref, w_ref, out_ref):
    """Fused 5-layer ray MLP.

    ray_ref: (TB, 2)        f32 raw rays (no wrapper-side lane padding).
    w_ref:   (5, 128, 128)  bf16 zero-padded weights. Layer i: rows [0, fan_in_i) hold
             W_i (in,out layout), row fan_in_i holds b_i, and for layers 0..3 that bias
             row also carries a 1.0 at column `hidden_dim` (bias-selector lane).
    out_ref: (TB, 128)      f32 lane-dense output (real values in columns [0, out_dim)).
    """
    rays = ray_ref[...]                                       # (TB, 2) f32

    # ---- Layer 0 on the VPU: y0 = r0*W0[0,:] + r1*W0[1,:] + b0 (real K is only 2). ----
    w0 = w_ref[0, 0:3, :].astype(jnp.float32)                 # rows: W0[0], W0[1], b0(+sel)
    y = (rays[:, 0:1] * w0[0:1, :]
         + rays[:, 1:2] * w0[1:2, :]
         + w0[2:3, :])                                        # (TB, 128)
    x = jnp.maximum(y, 0.0)                                   # ReLU keeps the 1.0 selector

    # ---- Layers 1..3: bf16 MXU matmuls, f32 accumulation, ReLU in f32. ----
    for layer in range(1, _N_LAYERS - 1):
        y = jnp.dot(x.astype(jnp.bfloat16), w_ref[layer],
                    preferred_element_type=jnp.float32)
        x = jnp.maximum(y, 0.0)

    # ---- Layer 4 (no ReLU): selector lane picks up b4 inside the matmul. ----
    out_ref[...] = jnp.dot(x.astype(jnp.bfloat16), w_ref[_N_LAYERS - 1],
                           preferred_element_type=jnp.float32)


def init_hypernetwork_params(key, ray_hidden_dim=100, out_dim=10):
    """PyTorch nn.Linear default init U(-1/sqrt(fan_in), 1/sqrt(fan_in)).
    Weights stored in (in, out) layout (already transposed for y = x @ W + b)."""
    dims = [2] + [ray_hidden_dim] * 4 + [out_dim]
    params = []
    for i in range(_N_LAYERS):
        fan_in, fan_out = dims[i], dims[i + 1]
        key, kw, kb = jax.random.split(key, 3)
        bound = 1.0 / jnp.sqrt(float(fan_in))
        w = jax.random.uniform(kw, (fan_in, fan_out), jnp.float32, -bound, bound)
        b = jax.random.uniform(kb, (fan_out,), jnp.float32, -bound, bound)
        params.append((w, b))
    return params


def pack_params(params, hidden_dim):
    """Pack 5 (W, b) pairs into one zero-padded bf16 (5, 128, 128) slab.

    Layer i occupies rows [0, fan_in_i) (weights) and row fan_in_i (bias).  For layers
    0..3 the bias row also carries a 1.0 at column `hidden_dim`: that lane becomes exactly
    1.0 in the layer output, survives ReLU, and multiplies the next layer's bias row, so
    every bias add happens inside the matmul with no per-layer VPU work.
    Call once and reuse the slab across forward calls (weights are constant).
    """
    assert hidden_dim + 1 <= _P, "hidden_dim must fit in 128 lanes incl. selector"
    slab = jnp.zeros((_N_LAYERS, _P, _P), jnp.float32)
    for i, (w, b) in enumerate(params):
        fan_in, fan_out = w.shape
        assert fan_in + 1 <= _P and fan_out <= _P, "layer dims must fit in 128 lanes"
        slab = slab.at[i, :fan_in, :fan_out].set(w.astype(jnp.float32))
        slab = slab.at[i, fan_in, :fan_out].set(b.astype(jnp.float32))
        if i < _N_LAYERS - 1:
            slab = slab.at[i, fan_in, hidden_dim].set(1.0)   # bias-selector propagation
    return slab.astype(jnp.bfloat16)


def _round_up(n, m):
    return (n + m - 1) // m * m


def hypernetwork_forward(ray, w_slab, *, out_dim):
    """ray: (2,) or (B, 2).

    Matches torch semantics of `self.ray_mlp(ray).unsqueeze(0)`:
      (2,)   ->  (1, out_dim)
      (B, 2) ->  (1, B, out_dim)
    """
    single = ray.ndim == 1
    ray2d = (ray.reshape(1, 2) if single else ray).astype(jnp.float32)
    b = ray2d.shape[0]

    # Row tiling: single block for small batches; >= 2 blocks for large batches so
    # megacore / 2-TC chips (v7x) can split the batch; up to 1024 rows per step.
    b_pad = _round_up(b, 8)
    if b_pad <= _SINGLE_BLOCK_MAX:
        tb = b_pad
    else:
        tb = min(_MAX_TILE, _round_up((b_pad + 1) // 2, 8))
        b_pad = _round_up(b_pad, tb)
    nb = b_pad // tb

    # Only wrapper-side input op: a tiny (rows, 2) zero row-pad when B % 8 != 0.
    x = ray2d if b_pad == b else jnp.pad(ray2d, ((0, b_pad - b), (0, 0)))

    out_padded = pl.pallas_call(
        _ray_mlp_kernel,
        out_shape=jax.ShapeDtypeStruct((b_pad, _P), jnp.float32),
        grid_spec=pltpu.PrefetchScalarGridSpec(
            num_scalar_prefetch=0,
            grid=(nb,),
            in_specs=[
                pl.BlockSpec((tb, 2), lambda i: (i, 0)),                 # raw ray rows
                pl.BlockSpec((_N_LAYERS, _P, _P), lambda i: (0, 0, 0)),  # resident weights
            ],
            out_specs=pl.BlockSpec((tb, _P), lambda i: (i, 0)),
        ),
        compiler_params=pltpu.CompilerParams(dimension_semantics=("parallel",)),
    )(x, w_slab)

    # Compact (B, out_dim) slice only because the module contract requires it;
    # fused downstream consumers could read the lane-dense padded slab directly.
    features = out_padded[:b, :out_dim]
    if single:
        features = features[0]
    return features[None]  # == torch .unsqueeze(0)


def _reference_forward(ray, params):
    """Plain-JAX reference of ray_mlp(ray).unsqueeze(0)."""
    single = ray.ndim == 1
    x = (ray.reshape(1, 2) if single else ray).astype(jnp.float32)
    for i, (w, b) in enumerate(params):
        x = x @ w + b
        if i < len(params) - 1:
            x = jnp.maximum(x, 0.0)
    if single:
        x = x[0]
    return x[None]


if __name__ == "__main__":
    key = jax.random.PRNGKey(0)
    key, kp, kr, kb, kc = jax.random.split(key, 5)

    ray_hidden_dim = 100   # module defaults
    out_dim = 10
    params = init_hypernetwork_params(kp, ray_hidden_dim=ray_hidden_dim, out_dim=out_dim)
    w_slab = pack_params(params, ray_hidden_dim)   # packed once; reused across calls

    # bf16 MXU feeding (f32 accumulation) -> small drift vs the f32 reference.
    ATOL = RTOL = 2e-2

    # Single-ray path (matches the original module's forward exactly).
    r = jax.random.uniform(kr, (2,), jnp.float32)
    ray = r / jnp.sum(r)
    out = hypernetwork_forward(ray, w_slab, out_dim=out_dim)
    out = jax.block_until_ready(out)
    ref = _reference_forward(ray, params)
    assert out.shape == (1, out_dim), out.shape
    assert jnp.allclose(out, ref, atol=ATOL, rtol=RTOL), (out, ref)

    # Batched path, single block.
    B = 64
    rays = jax.random.uniform(kb, (B, 2), jnp.float32)
    rays = rays / jnp.sum(rays, axis=1, keepdims=True)
    out_b = hypernetwork_forward(rays, w_slab, out_dim=out_dim)
    out_b = jax.block_until_ready(out_b)
    ref_b = _reference_forward(rays, params)
    assert out_b.shape == (1, B, out_dim), out_b.shape
    assert jnp.allclose(out_b, ref_b, atol=ATOL, rtol=RTOL)

    # Batched path, multi-block grid (exercises >=2 grid steps + row padding).
    B2 = 300
    rays2 = jax.random.uniform(kc, (B2, 2), jnp.float32)
    rays2 = rays2 / jnp.sum(rays2, axis=1, keepdims=True)
    out_b2 = hypernetwork_forward(rays2, w_slab, out_dim=out_dim)
    out_b2 = jax.block_until_ready(out_b2)
    ref_b2 = _reference_forward(rays2, params)
    assert out_b2.shape == (1, B2, out_dim), out_b2.shape
    assert jnp.allclose(out_b2, ref_b2, atol=ATOL, rtol=RTOL)

    print("KERNEL_OK")
</pallas_src>

<mosaic_0001>
module attributes {stable_mosaic.version = 11 : i64} {
  func.func @_ray_mlp_kernel(%arg0: i32, %arg1: memref<8x2xf32, #tpu.memory_space<vmem>>, %arg2: memref<5x128x128xbf16, #tpu.memory_space<vmem>>, %arg3: memref<8x128xf32, #tpu.memory_space<vmem>>) attributes {dimension_semantics = [#tpu.dimension_semantics<parallel>], iteration_bounds = array<i64: 1>, scalar_prefetch = 0 : i64, scratch_operands = 0 : i64, tpu.core_type = #tpu.core_type<tc>, window_params = [{transform_indices = @transform_0, window_bounds = array<i64: 8, 2>}, {pipeline_mode = #tpu.pipeline_mode<synchronous>, transform_indices = @transform_1, window_bounds = array<i64: 5, 128, 128>}, {transform_indices = @transform_2, window_bounds = array<i64: 8, 128>}]} {
    %c0 = arith.constant 0 : index
    %c0_0 = arith.constant 0 : index
    %0 = vector.load %arg1[%c0, %c0_0] : memref<8x2xf32, #tpu.memory_space<vmem>>, vector<8x2xf32>
    %c0_1 = arith.constant 0 : index
    %c0_2 = arith.constant 0 : index
    %c0_3 = arith.constant 0 : index
    %1 = vector.load %arg2[%c0_1, %c0_2, %c0_3] : memref<5x128x128xbf16, #tpu.memory_space<vmem>>, vector<1x3x128xbf16>
    %2 = vector.shape_cast %1 : vector<1x3x128xbf16> to vector<3x128xbf16>
    %3 = arith.extf %2 : vector<3x128xbf16> to vector<3x128xf32>
    %4 = vector.extract_strided_slice %0 {offsets = [0, 0], sizes = [8, 1], strides = [1, 1]} : vector<8x2xf32> to vector<8x1xf32>
    %5 = vector.extract_strided_slice %3 {offsets = [0, 0], sizes = [1, 128], strides = [1, 1]} : vector<3x128xf32> to vector<1x128xf32>
    %6 = vector.broadcast %4 : vector<8x1xf32> to vector<8x128xf32>
    %7 = vector.broadcast %5 : vector<1x128xf32> to vector<8x128xf32>
    %8 = arith.mulf %6, %7 : vector<8x128xf32>
    %9 = vector.extract_strided_slice %0 {offsets = [0, 1], sizes = [8, 1], strides = [1, 1]} : vector<8x2xf32> to vector<8x1xf32>
    %10 = vector.extract_strided_slice %3 {offsets = [1, 0], sizes = [1, 128], strides = [1, 1]} : vector<3x128xf32> to vector<1x128xf32>
    %11 = vector.broadcast %9 : vector<8x1xf32> to vector<8x128xf32>
    %12 = vector.broadcast %10 : vector<1x128xf32> to vector<8x128xf32>
    %13 = arith.mulf %11, %12 : vector<8x128xf32>
    %14 = arith.addf %8, %13 : vector<8x128xf32>
    %15 = vector.extract_strided_slice %3 {offsets = [2, 0], sizes = [1, 128], strides = [1, 1]} : vector<3x128xf32> to vector<1x128xf32>
    %16 = vector.broadcast %15 : vector<1x128xf32> to vector<8x128xf32>
    %17 = arith.addf %14, %16 : vector<8x128xf32>
    %cst = arith.constant 0.000000e+00 : f32
    %18 = vector.broadcast %cst : f32 to vector<8x128xf32>
    %19 = arith.maximumf %17, %18 : vector<8x128xf32>
    %20 = arith.truncf %19 : vector<8x128xf32> to vector<8x128xbf16>
    %c1 = arith.constant 1 : index
    %c0_4 = arith.constant 0 : index
    %c0_5 = arith.constant 0 : index
    %21 = vector.load %arg2[%c1, %c0_4, %c0_5] : memref<5x128x128xbf16, #tpu.memory_space<vmem>>, vector<1x128x128xbf16>
    %22 = vector.shape_cast %21 : vector<1x128x128xbf16> to vector<128x128xbf16>
    %cst_6 = arith.constant dense<0.000000e+00> : vector<8x128xf32>
    %23 = tpu.matmul %20, %22, %cst_6 {dimension_numbers = #tpu.dot_dimension_numbers<[1], [0], [0], [1], [0, 0, 1, 1], [], []>} : vector<8x128xbf16>, vector<128x128xbf16>, vector<8x128xf32> -> vector<8x128xf32>
    %cst_7 = arith.constant 0.000000e+00 : f32
    %24 = vector.broadcast %cst_7 : f32 to vector<8x128xf32>
    %25 = arith.maximumf %23, %24 : vector<8x128xf32>
    %26 = arith.truncf %25 : vector<8x128xf32> to vector<8x128xbf16>
    %c2 = arith.constant 2 : index
    %c0_8 = arith.constant 0 : index
    %c0_9 = arith.constant 0 : index
    %27 = vector.load %arg2[%c2, %c0_8, %c0_9] : memref<5x128x128xbf16, #tpu.memory_space<vmem>>, vector<1x128x128xbf16>
    %28 = vector.shape_cast %27 : vector<1x128x128xbf16> to vector<128x128xbf16>
    %cst_10 = arith.constant dense<0.000000e+00> : vector<8x128xf32>
    %29 = tpu.matmul %26, %28, %cst_10 {dimension_numbers = #tpu.dot_dimension_numbers<[1], [0], [0], [1], [0, 0, 1, 1], [], []>} : vector<8x128xbf16>, vector<128x128xbf16>, vector<8x128xf32> -> vector<8x128xf32>
    %cst_11 = arith.constant 0.000000e+00 : f32
    %30 = vector.broadcast %cst_11 : f32 to vector<8x128xf32>
    %31 = arith.maximumf %29, %30 : vector<8x128xf32>
    %32 = arith.truncf %31 : vector<8x128xf32> to vector<8x128xbf16>
    %c3 = arith.constant 3 : index
    %c0_12 = arith.constant 0 : index
    %c0_13 = arith.constant 0 : index
    %33 = vector.load %arg2[%c3, %c0_12, %c0_13] : memref<5x128x128xbf16, #tpu.memory_space<vmem>>, vector<1x128x128xbf16>
    %34 = vector.shape_cast %33 : vector<1x128x128xbf16> to vector<128x128xbf16>
    %cst_14 = arith.constant dense<0.000000e+00> : vector<8x128xf32>
    %35 = tpu.matmul %32, %34, %cst_14 {dimension_numbers = #tpu.dot_dimension_numbers<[1], [0], [0], [1], [0, 0, 1, 1], [], []>} : vector<8x128xbf16>, vector<128x128xbf16>, vector<8x128xf32> -> vector<8x128xf32>
    %cst_15 = arith.constant 0.000000e+00 : f32
    %36 = vector.broadcast %cst_15 : f32 to vector<8x128xf32>
    %37 = arith.maximumf %35, %36 : vector<8x128xf32>
    %38 = arith.truncf %37 : vector<8x128xf32> to vector<8x128xbf16>
    %c4 = arith.constant 4 : index
    %c0_16 = arith.constant 0 : index
    %c0_17 = arith.constant 0 : index
    %39 = vector.load %arg2[%c4, %c0_16, %c0_17] : memref<5x128x128xbf16, #tpu.memory_space<vmem>>, vector<1x128x128xbf16>
    %40 = vector.shape_cast %39 : vector<1x128x128xbf16> to vector<128x128xbf16>
    %cst_18 = arith.constant dense<0.000000e+00> : vector<8x128xf32>
    %41 = tpu.matmul %38, %40, %cst_18 {dimension_numbers = #tpu.dot_dimension_numbers<[1], [0], [0], [1], [0, 0, 1, 1], [], []>} : vector<8x128xbf16>, vector<128x128xbf16>, vector<8x128xf32> -> vector<8x128xf32>
    %c0_19 = arith.constant 0 : index
    %c0_20 = arith.constant 0 : index
    %42 = vector.load %arg3[%c0_19, %c0_20] : memref<8x128xf32, #tpu.memory_space<vmem>>, vector<8x128xf32>
    tpu.vector_store %arg3[%c0_19, %c0_20], %41 {strides = array<i32>} : memref<8x128xf32, #tpu.memory_space<vmem>>, vector<8x128xf32>,
    return
  }
  func.func @transform_0(%arg0: i32) -> (i32, i32) {
    %c0_i32 = arith.constant 0 : i32
    %c0_i32_0 = arith.constant 0 : i32
    return %arg0, %c0_i32 : i32, i32
  }
  func.func @transform_1(%arg0: i32) -> (i32, i32, i32) {
    %c0_i32 = arith.constant 0 : i32
    %c0_i32_0 = arith.constant 0 : i32
    %c0_i32_1 = arith.constant 0 : i32
    %c0_i32_2 = arith.constant 0 : i32
    return %c0_i32, %c0_i32_0, %c0_i32_1 : i32, i32, i32
  }
  func.func @transform_2(%arg0: i32) -> (i32, i32) {
    %c0_i32 = arith.constant 0 : i32
    %c0_i32_0 = arith.constant 0 : i32
    return %arg0, %c0_i32 : i32, i32
  }
}

</mosaic_0001>

<bundles_post_ra>
// kernel: tpu_custom_call.1
= control target key start
LH: loop header
LB: loop body
LE: loop exit
PB: predicated region body
PF: predicated region fallthrough
CT: control target
= control target key end

     0   :  { %7 = vsyncpa [#allocation3], 0  ;;  %s805_s0 = inlined_call_operand.vmem [shape: f32[8,2], index: 0, kind: input, shape index: {}]   ;;  %s806_s1 = inlined_call_operand.hbm [shape: bf16[5,128,128], index: 1, kind: input, shape index: {}]   ;;  %s807_s2 = inlined_call_operand.hbm [shape: f32[8,128], index: 2, kind: output, shape index: {}]  }
   0x1   :  { %8 = vsyncpa [#allocation4], 0  ;;  %s733_s9 = smov [#allocation2]  }
   0x2   :  { %s16_s10 = sshll.u32 %s733_s9, 4  ;;  %s17_s10 = int_to_ptr.vmem [resolvable:$true] %s16_s10 }
   0x3   :  { %s697_s11 = scalar_lea.vmem %s17_s10, 5120  ;;  %p702_p1 = scmp.lt.s32.totalorder %s17_s10, %s17_s10 }
   0x4   :  { %p698_p0 = scmp.ne.s32.totalorder %s17_s10, %s697_s11  ;;  %p703_p2 = scmp.lt.s32.totalorder %s697_s11, %s697_s11 }
   0x6   :  { %p704_p3 = por %p703_p2, %p702_p1 }
   0x8   :  { %p705_p4 = pnand %p704_p3, %p698_p0 }
   0xa   :  { %708 = shalt.err (!%p705_p4)
}
   0xb   :  { %s734_s12 = smov 64   ;;  %s735_s13 = smov 4  }
   0xc   :  { %22 = dma.hbm_to_vmem [thread:$0]  %s806_s1, 5120, %s17_s10, [#allocation3], %s734_s12, %s734_s12, %s735_s13  }
   0xd   :  { %729 = dma.done.wait [#allocation3], 5120  }
   0xe   :  { %730 = vsyncadd [#allocation3], 4294962176  ;;  %v736_v0 = vmov 0   ;;  %v737_v1 = vmov 0.0   ;;  %v27_v2 = vld [vmem:[%s805_s0] sm:$0xff]  ;;  %v657_v3 = vld [vmem:[#allocation2 + $0x78] sm:$0xff]   ;;  %v35_v19 = vlaneseq }
   0xf   :  { %655 = vset.pattern.permute.xlu0 %v736_v0  ;;  %567 = vmatprep.subr.bf16.mxu0 %v737_v1  ;;  %v658_v4 = vld [vmem:[#allocation2 + $0x70] sm:$0xff]   ;;  %v738_v5 = vmov 1   ;;  %v659_v6 = vld [vmem:[#allocation2 + $0x68] sm:$0xff]   ;;  %vm739_vm0 = vmmov 0   ;;  %v660_v7 = vld [vmem:[#allocation2 + $0x60] sm:$0xff]   ;;  %s740_s0 = smov [#allocation5]  }
  0x10   :  { %587 = vmatprep.subr.bf16.mxu1 %v737_v1  ;;  %32 = vperm.xlu0 %655, %v27_v2   ;;  %v665_v8 = vld [vmem:[#allocation2 + $0xb8] sm:$0xff]   ;;  %v666_v9 = vld [vmem:[#allocation2 + $0xb0] sm:$0xff]   ;;  %v667_v11 = vld [vmem:[#allocation2 + $0xa8] sm:$0xff]   ;;  %v36_v20 = vshrl.u32 %v35_v19, 7  ;;  %s490_s1 = sshll.u32 %s740_s0, 4  ;;  %s491_s1 = int_to_ptr.vmem [resolvable:$true] %s490_s1 }
  0x11   :  { %568 = vmatpush3.bf16.msra.mxu0 %v657_v3  ;;  %583 = vmatprep.mubr.msk.bf16.mxu0 %vm739_vm0, %v737_v1  ;;  %v661_v10 = vld [vmem:[#allocation2 + $0x58] sm:$0xff]   ;;  %v662_v12 = vld [vmem:[#allocation2 + $0x50] sm:$0xff]   ;;  %v668_v13 = vld [vmem:[#allocation2 + $0xa0] sm:$0xff]   ;;  %s709_s18 = scalar_lea.vmem %s491_s1, 128  ;;  %p714_p6 = scmp.lt.s32.totalorder %s491_s1, %s491_s1 }
  0x12   :  { %569 = vmatprep.subr.bf16.mxu0 %v737_v1  ;;  %603 = vmatprep.mubr.msk.bf16.mxu1 %vm739_vm0, %v737_v1  ;;  %v663_v14 = vld [vmem:[#allocation2 + $0x48] sm:$0xff]   ;;  %v669_v15 = vld [vmem:[#allocation2 + $0x98] sm:$0xff]   ;;  %v664_v16 = vld [vmem:[#allocation2 + $0x40] sm:$0xff]   ;;  %v37_v23 = vsub.s32 0, %v36_v20  ;;  %v46_v24 = vsub.s32 1, %v36_v20  ;;  %v52_v28 = vsub.s32 2, %v36_v20  ;;  %p710_p5 = scmp.ne.s32.totalorder %s491_s1, %s709_s18  ;;  %p715_p7 = scmp.lt.s32.totalorder %s709_s18, %s709_s18 }
  0x13   :  { %588 = vmatpush3.bf16.msra.mxu1 %v665_v8  ;;  %v670_v17 = vld [vmem:[#allocation2 + $0x90] sm:$0xff]   ;;  %v671_v18 = vld [vmem:[#allocation2 + $0x88] sm:$0xff]   ;;  %v28_v21 = vld [vmem:[#allocation2] sm:$0x3] }
  0x14   :  { %656 = vset.pattern.permute.xlu0 %v738_v5  ;;  %589 = vmatprep.subr.bf16.mxu1 %v737_v1  ;;  %v29_v22 = vunpack.c.l.bf16 %v28_v21  ;;  %v672_v37 = vld [vmem:[#allocation2 + $0x80] sm:$0xff]   ;;  %v673_v38 = vld [vmem:[#allocation2 + $0xf8] sm:$0xff]   ;;  %v674_v39 = vld [vmem:[#allocation2 + $0xf0] sm:$0xff]   ;;  %p716_p8 = por %p715_p7, %p714_p6 }
  0x15   :  { %41 = vperm.xlu0 %656, %v27_v2   ;;  %570 = vmatpush3.bf16.msra.mxu0 %v658_v4  ;;  %v675_v40 = vld [vmem:[#allocation2 + $0xe8] sm:$0xff]   ;;  %v676_v41 = vld [vmem:[#allocation2 + $0xe0] sm:$0xff]   ;;  %v677_v42 = vld [vmem:[#allocation2 + $0xd8] sm:$0xff]  }
  0x16   :  { %571 = vmatprep.subr.bf16.mxu0 %v737_v1  ;;  %v38_v26 = vrot.slane %v29_v22, %v37_v23  ;;  %v47_v27 = vrot.slane %v29_v22, %v46_v24  ;;  %v53_v31 = vrot.slane %v29_v22, %v52_v28  ;;  %v678_v43 = vld [vmem:[#allocation2 + $0xd0] sm:$0xff]   ;;  %v679_v44 = vld [vmem:[#allocation2 + $0xc8] sm:$0xff]   ;;  %v680_v51 = vld [vmem:[#allocation2 + $0xc0] sm:$0xff]   ;;  %p717_p9 = pnand %p716_p8, %p710_p5 }
  0x17   :  { %590 = vmatpush3.bf16.msra.mxu1 %v666_v9  ;;  %v681_v52 = vld [vmem:[#allocation2 + $0x138] sm:$0xff]   ;;  %v682_v53 = vld [vmem:[#allocation2 + $0x130] sm:$0xff]   ;;  %v683_v54 = vld [vmem:[#allocation2 + $0x128] sm:$0xff]  }
  0x18   :  { %591 = vmatprep.subr.bf16.mxu1 %v737_v1  ;;  %v684_v55 = vld [vmem:[#allocation2 + $0x120] sm:$0xff]   ;;  %v685_v56 = vld [vmem:[#allocation2 + $0x118] sm:$0xff]   ;;  %v686_v57 = vld [vmem:[#allocation2 + $0x110] sm:$0xff]  }
  0x19   :  { %572 = vmatpush3.bf16.msra.mxu0 %v659_v6  ;;  %v687_v58 = vld [vmem:[#allocation2 + $0x108] sm:$0xff]   ;;  %v688_v2 = vld [vmem:[#allocation2 + $0x100] sm:$0xff]  }
  0x1a   :  { %573 = vmatprep.subr.bf16.mxu0 %v737_v1 }
  0x1b   :  { %592 = vmatpush3.bf16.msra.mxu1 %v667_v11 }
  0x1c   :  { %593 = vmatprep.subr.bf16.mxu1 %v737_v1 }
  0x1d   :  { %574 = vmatpush3.bf16.msra.mxu0 %v660_v7 }
  0x1e   :  { %575 = vmatprep.subr.bf16.mxu0 %v737_v1 }
  0x1f   :  { %594 = vmatpush3.bf16.msra.mxu1 %v668_v13 }
  0x20   :  { %595 = vmatprep.subr.bf16.mxu1 %v737_v1 }
  0x21   :  { %576 = vmatpush3.bf16.msra.mxu0 %v661_v10 }
  0x22   :  { %577 = vmatprep.subr.bf16.mxu0 %v737_v1 }
  0x23   :  { %596 = vmatpush3.bf16.msra.mxu1 %v669_v15 }
  0x24   :  { %597 = vmatprep.subr.bf16.mxu1 %v737_v1 }
  0x25   :  { %578 = vmatpush3.bf16.msra.mxu0 %v662_v12 }
  0x26   :  { %579 = vmatprep.subr.bf16.mxu0 %v737_v1 }
  0x27   :  { %598 = vmatpush3.bf16.msra.mxu1 %v670_v17 }
  0x28   :  { %599 = vmatprep.subr.bf16.mxu1 %v737_v1 }
  0x29   :  { %580 = vmatpush3.bf16.msra.mxu0 %v663_v14 }
  0x2a   :  { %581 = vmatprep.subr.bf16.mxu0 %v737_v1 }
  0x2b   :  { %600 = vmatpush3.bf16.msra.mxu1 %v671_v18 }
  0x2c   :  { %601 = vmatprep.subr.bf16.mxu1 %v737_v1 }
  0x2d   :  { %582 = vmatpush3.bf16.msra.mxu0 %v664_v16 }
  0x2e   :  { %607 = vmatprep.subr.bf16.mxu0 %v737_v1 }
  0x2f   :  { %602 = vmatpush3.bf16.msra.mxu1 %v672_v37 }
  0x30   :  { %627 = vmatprep.subr.bf16.mxu1 %v737_v1 }
  0x8b   :  { %v33_v25 = vpop.permute.xlu0 %32 }
  0x8c   :  { %v39_v30 = vmul.f32 %v38_v26, %v33_v25 }
  0x90   :  { %v42_v29 = vpop.permute.xlu0 %41 }
  0x91   :  { %v48_v32 = vmul.f32 %v47_v27, %v42_v29 }
  0x93   :  { %v49_v33 = vadd.f32 %v48_v32, %v39_v30 }
  0x95   :  { %v54_v34 = vadd.f32 %v53_v31, %v49_v33 }
  0x97   :  { %v55_v35 = vmax.f32 %v54_v34, 0.0 }
  0x99   :  { %v56_v36 = vpack.c.bf16 %v55_v35, %v55_v35 }
  0x9b   :  { %584 = vmatmul.mubr.bf16.vlgmr.msra.gmra.mxu0 %v56_v36 }
  0x9c   :  { %623 = vmatprep.mubr.msk.bf16.mxu0 %vm739_vm0, %v737_v1  ;;  %608 = vmatpush3.bf16.msra.mxu0 %v673_v38 }
  0x9d   :  { %609 = vmatprep.subr.bf16.mxu0 %v737_v1 }
  0xa0   :  { %610 = vmatpush3.bf16.msra.mxu0 %v674_v39 }
  0xa1   :  { %611 = vmatprep.subr.bf16.mxu0 %v737_v1 }
  0xa4   :  { %612 = vmatpush3.bf16.msra.mxu0 %v675_v40 }
  0xa5   :  { %613 = vmatprep.subr.bf16.mxu0 %v737_v1 }
  0xa8   :  { %614 = vmatpush3.bf16.msra.mxu0 %v676_v41 }
  0xa9   :  { %615 = vmatprep.subr.bf16.mxu0 %v737_v1 }
  0xac   :  { %616 = vmatpush3.bf16.msra.mxu0 %v677_v42 }
  0xad   :  { %617 = vmatprep.subr.bf16.mxu0 %v737_v1 }
  0xb0   :  { %618 = vmatpush3.bf16.msra.mxu0 %v678_v43 }
  0xb1   :  { %619 = vmatprep.subr.bf16.mxu0 %v737_v1 }
  0xb4   :  { %620 = vmatpush3.bf16.msra.mxu0 %v679_v44 }
  0xb5   :  { %621 = vmatprep.subr.bf16.mxu0 %v737_v1 }
  0xb8   :  { %622 = vmatpush3.bf16.msra.mxu0 %v680_v51 }
 0x15b   :  { %v156_v45 = vpop.f32.mrf.mxu0 }
 0x15c   :  { %v162_v46 = vmax.f32 %v156_v45, 0.0 }
 0x15d   :  { %v585_v47 = vpop.f32.mrf.mxu0 }
 0x15e   :  { %v163_v48 = vpack.c.bf16 %v162_v46, %v162_v46 }
 0x15f   :  { %v159_v49 = vpop.f32.mrf.mxu0 }
 0x160   :  { %604 = vmatmul.mubr.bf16.vlgmr.msra.gmra.mxu1 %v163_v48 }
 0x161   :  { %v586_v50 = vpop.f32.mrf.mxu0  ;;  %643 = vmatprep.mubr.msk.bf16.mxu1 %vm739_vm0, %v737_v1  ;;  %628 = vmatpush3.bf16.msra.mxu1 %v681_v52 }
 0x162   :  { %629 = vmatprep.subr.bf16.mxu1 %v737_v1 }
 0x165   :  { %630 = vmatpush3.bf16.msra.mxu1 %v682_v53 }
 0x166   :  { %631 = vmatprep.subr.bf16.mxu1 %v737_v1 }
 0x169   :  { %632 = vmatpush3.bf16.msra.mxu1 %v683_v54 }
 0x16a   :  { %633 = vmatprep.subr.bf16.mxu1 %v737_v1 }
 0x16d   :  { %634 = vmatpush3.bf16.msra.mxu1 %v684_v55 }
 0x16e   :  { %635 = vmatprep.subr.bf16.mxu1 %v737_v1 }
 0x171   :  { %636 = vmatpush3.bf16.msra.mxu1 %v685_v56 }
 0x172   :  { %637 = vmatprep.subr.bf16.mxu1 %v737_v1 }
 0x175   :  { %638 = vmatpush3.bf16.msra.mxu1 %v686_v57 }
 0x176   :  { %639 = vmatprep.subr.bf16.mxu1 %v737_v1 }
 0x179   :  { %640 = vmatpush3.bf16.msra.mxu1 %v687_v58 }
 0x17a   :  { %641 = vmatprep.subr.bf16.mxu1 %v737_v1 }
 0x17d   :  { %642 = vmatpush3.bf16.msra.mxu1 %v688_v2 }
 0x220   :  { %v263_v59 = vpop.f32.mrf.mxu1 }
 0x221   :  { %v269_v60 = vmax.f32 %v263_v59, 0.0 }
 0x222   :  { %v605_v61 = vpop.f32.mrf.mxu1 }
 0x223   :  { %v270_v62 = vpack.c.bf16 %v269_v60, %v269_v60 }
 0x224   :  { %v266_v63 = vpop.f32.mrf.mxu1 }
 0x225   :  { %624 = vmatmul.mubr.bf16.vlgmr.msra.gmra.mxu0 %v270_v62 }
 0x226   :  { %v606_v0 = vpop.f32.mrf.mxu1 }
 0x2e5   :  { %v370_v3 = vpop.f32.mrf.mxu0 }
 0x2e6   :  { %v376_v4 = vmax.f32 %v370_v3, 0.0 }
 0x2e7   :  { %v625_v5 = vpop.f32.mrf.mxu0 }
 0x2e8   :  { %v377_v6 = vpack.c.bf16 %v376_v4, %v376_v4 }
 0x2e9   :  { %v373_v7 = vpop.f32.mrf.mxu0 }
 0x2ea   :  { %644 = vmatmul.mubr.bf16.vlgmr.msra.gmra.mxu1 %v377_v6 }
 0x2eb   :  { %v626_v8 = vpop.f32.mrf.mxu0 }
 0x3aa   :  { %v477_v1 = vpop.f32.mrf.mxu1 }
 0x3ab   :  { %483 = vst [vmem:[#allocation5] sm:$0xff] %v477_v1 }
 0x3ac   :  { %v645_v9 = vpop.f32.mrf.mxu1 }
 0x3ad   :  { %720 = shalt.err (!%p717_p9)
}
 0x3ae   :  { %493 = dma.vmem_to_hbm [thread:$0]  %s491_s1, 128, %s807_s2, [#allocation4]   ;;  %v480_v10 = vpop.f32.mrf.mxu1 }
 0x3b0   :  { %v646_v11 = vpop.f32.mrf.mxu1 }
 0x3b1   :  { %731 = dma.done.wait [#allocation4], 128  }
 0x3b2   :  { %732 = vsyncadd [#allocation4], 4294967168 }
 0x3b3   :  { %497 = vsyncpa [#allocation3], 1 }
 0x3b4   :  { %498 = vsyncpa [#allocation4], 1 }

</bundles_post_ra>
